<compile_context>
chip_gen: v6e
topology: v6e:2x2x1
jax: 0.10.0
libtpu: 0.0.40
codegen_flags: <defaults>
</compile_context>

<pallas_src>
import math
from functools import partial

import jax
import jax.numpy as jnp
from jax import lax
from jax.experimental import pallas as pl
from jax.experimental.pallas import tpu as pltpu

_MIB = 1024 * 1024


def _vmem_capacity_bytes():
    """Physical per-core VMEM capacity; conservative fallback if query fails."""
    try:
        info = pltpu.get_tpu_info()
        cap = getattr(info, "vmem_capacity_bytes", None)
        if cap:
            return int(cap)
    except Exception:
        pass
    return 64 * _MIB  # v7x per-TensorCore size: most conservative assumption


# ----------------------------- kernel bodies --------------------------------

def _attend(q_ref, k_ref, v_ref, mask, out_ref, attn_ref, *, scale, use_bf16_matmul):
    q = q_ref[...]
    k = k_ref[...]
    v = v_ref[...]

    # Fold 1/sqrt(D) into q (Tq*D multiplies instead of Tq*Tk).
    qs = q * scale

    # Optional bf16 MXU fast path for f32 inputs (f32 accumulation kept via
    # preferred_element_type). Off by default to preserve exact f32 parity.
    to_bf16 = use_bf16_matmul and q.dtype == jnp.float32
    if to_bf16:
        qs = qs.astype(jnp.bfloat16)
        k = k.astype(jnp.bfloat16)

    # Batched q @ k^T: contract last dims of both operands (no k transpose).
    qk = lax.dot_general(qs, k, (((2,), (2,)), ((0,), (0,))),
                         preferred_element_type=jnp.float32)      # (Bblk,tq,Tk) f32

    if mask is not None:
        # masked_fill(mask, -inf): parity with torch (fully-masked rows -> NaN).
        # mask block is (Bblk,tq,Tk) dense or (Bblk,1,Tk) key-padding; broadcast.
        qk = jnp.where(mask != 0, -jnp.inf, qk)

    # Numerically stable softmax in f32.  Exact normalization (no approximate
    # reciprocal) because attn itself is a returned output.
    m = jnp.max(qk, axis=-1, keepdims=True)
    e = jnp.exp(qk - m)
    s = jnp.sum(e, axis=-1, keepdims=True)
    attn = e / s                                                   # (Bblk,tq,Tk) f32

    if to_bf16 and v.dtype == jnp.float32:
        p = attn.astype(jnp.bfloat16)
        vv = v.astype(jnp.bfloat16)
    else:
        p = attn.astype(v.dtype)
        vv = v
    out = lax.dot_general(p, vv, (((2,), (1,)), ((0,), (0,))),
                          preferred_element_type=jnp.float32)      # (Bblk,tq,Dv) f32

    attn_ref[...] = attn.astype(attn_ref.dtype)
    out_ref[...] = out.astype(out_ref.dtype)


def _sdpa_kernel(q_ref, k_ref, v_ref, out_ref, attn_ref, *, scale, use_bf16_matmul):
    _attend(q_ref, k_ref, v_ref, None, out_ref, attn_ref,
            scale=scale, use_bf16_matmul=use_bf16_matmul)


def _sdpa_masked_kernel(q_ref, k_ref, v_ref, m_ref, out_ref, attn_ref, *,
                        scale, use_bf16_matmul):
    _attend(q_ref, k_ref, v_ref, m_ref[...], out_ref, attn_ref,
            scale=scale, use_bf16_matmul=use_bf16_matmul)


# ----------------------------- block sizing ----------------------------------

def _choose_tiles(B, Tq, Tk, D, Dv, in_itemsize, out_itemsize, attn_itemsize,
                  mask_kind, mask_itemsize, budget_bytes):
    """Largest (bblk, tq) whose double-buffered per-step footprint fits budget."""

    def footprint(bblk, tq):
        blocks = bblk * (tq * D + Tk * D + Tk * Dv) * in_itemsize       # q, k, v
        blocks += bblk * tq * Dv * out_itemsize                         # qkv out
        blocks += bblk * tq * Tk * attn_itemsize                        # attn out
        if mask_kind == "dense":
            blocks += bblk * tq * Tk * mask_itemsize
        elif mask_kind == "kpad":
            blocks += bblk * Tk * mask_itemsize
        temps = bblk * tq * Tk * 4 * 2 + bblk * tq * Dv * 4             # f32 temps
        return 2 * blocks + temps                                       # x2 double buffer

    tq_cands = sorted(
        {d for d in range(8, min(Tq, 512) + 1, 8) if Tq % d == 0} | {Tq},
        reverse=True)
    b_cands = sorted({d for d in range(1, B + 1) if B % d == 0}, reverse=True)

    # Prefer big tq first (maximizes k/v reuse across the query axis), then the
    # biggest bblk that fits -> "trim bblk before shrinking tq below 128".
    for tq in tq_cands:
        for bblk in b_cands:
            if footprint(bblk, tq) <= budget_bytes:
                return bblk, tq, footprint(bblk, tq)

    # Nothing fits the budget: smallest tiles, rely on a raised vmem limit.
    # TODO(synk): tile Tk (two-pass softmax / flash-style) for very long keys.
    tq = tq_cands[-1]
    return 1, tq, footprint(1, tq)


def _ensure_multistep(B, Tq, bblk, tq):
    """Keep >=2 grid steps when splittable so both v7x TensorCores are used."""
    if (B // bblk) * (Tq // tq) > 1:
        return bblk, tq
    if bblk > 1:
        for d in range(bblk // 2, 0, -1):
            if B % d == 0:
                return d, tq
    if tq % 16 == 0:
        return bblk, tq // 2
    return bblk, tq


# ------------------------------- wrapper -------------------------------------

def scaled_dot_product_attention(key, value, query, mask=None, *,
                                 attn_dtype=None, use_bf16_matmul=False):
    """Pallas equivalent of ScaledDotProductAttention.forward(key, value, query, mask)."""
    key = jnp.asarray(key)
    value = jnp.asarray(value)
    query = jnp.asarray(query)
    B, Tk, D = key.shape
    Bq, Tq, Dq = query.shape
    Dv = value.shape[2]
    if Bq != B or Dq != D or value.shape[0] != B or value.shape[1] != Tk:
        raise ValueError("inconsistent query/key/value shapes")

    dtype = query.dtype
    in_itemsize = jnp.dtype(dtype).itemsize
    out_dtype = dtype
    attn_out_dtype = jnp.dtype(attn_dtype) if attn_dtype is not None else jnp.dtype(dtype)

    scale = 1.0 / math.sqrt(D)

    # --- mask normalization ---------------------------------------------------
    mask_kind = None
    mask_arr = None
    mask_itemsize = 0
    if mask is not None:
        mask = jnp.asarray(mask)
        if mask.ndim == 2:
            mask = mask[:, None, :]
        if mask.shape == (B, 1, Tk):
            mask_kind = "kpad"          # tiny B*Tk stream, broadcast in-kernel
            mask_arr = mask.astype(jnp.int32)
            mask_itemsize = 4
        elif mask.shape == (B, Tq, Tk):
            mask_kind = "dense"         # 1 byte/elem HBM read
            mask_arr = mask if mask.dtype == jnp.int8 else mask.astype(jnp.int8)
            mask_itemsize = 1
        else:
            raise ValueError(f"unsupported mask shape {mask.shape}")

    # --- generation-aware block sizing (double buffering accounted) -----------
    vmem_cap = _vmem_capacity_bytes()          # 128 MiB v5e/v6e, 64 MiB v7x
    budget = min(vmem_cap // 4, 16 * _MIB)     # per-step working-set target
    bblk, tq, fp = _choose_tiles(
        B, Tq, Tk, D, Dv, in_itemsize, jnp.dtype(out_dtype).itemsize,
        jnp.dtype(attn_out_dtype).itemsize, mask_kind, mask_itemsize, budget)
    bblk, tq = _ensure_multistep(B, Tq, bblk, tq)
    grid = (B // bblk, Tq // tq)

    vmem_limit = int(min(vmem_cap * 3 // 4, max(32 * _MIB, 2 * fp)))

    # --- specs -----------------------------------------------------------------
    q_spec = pl.BlockSpec((bblk, tq, D), lambda b, i: (b, i, 0))
    k_spec = pl.BlockSpec((bblk, Tk, D), lambda b, i: (b, 0, 0))
    v_spec = pl.BlockSpec((bblk, Tk, Dv), lambda b, i: (b, 0, 0))
    in_specs = [q_spec, k_spec, v_spec]
    args = [query, key, value]
    if mask_kind == "dense":
        in_specs.append(pl.BlockSpec((bblk, tq, Tk), lambda b, i: (b, i, 0)))
        args.append(mask_arr)
    elif mask_kind == "kpad":
        in_specs.append(pl.BlockSpec((bblk, 1, Tk), lambda b, i: (b, 0, 0)))
        args.append(mask_arr)

    out_specs = (
        pl.BlockSpec((bblk, tq, Dv), lambda b, i: (b, i, 0)),   # qkv
        pl.BlockSpec((bblk, tq, Tk), lambda b, i: (b, i, 0)),   # attn
    )
    out_shapes = (
        jax.ShapeDtypeStruct((B, Tq, Dv), out_dtype),
        jax.ShapeDtypeStruct((B, Tq, Tk), attn_out_dtype),
    )

    mask_bytes = 0
    if mask_kind == "dense":
        mask_bytes = B * Tq * Tk * mask_itemsize
    elif mask_kind == "kpad":
        mask_bytes = B * Tk * mask_itemsize
    cost = pl.CostEstimate(
        flops=2 * B * Tq * Tk * (D + Dv),
        transcendentals=B * Tq * Tk,
        bytes_accessed=(B * Tq * D + B * Tk * D + B * Tk * Dv) * in_itemsize
        + B * Tq * Dv * jnp.dtype(out_dtype).itemsize
        + B * Tq * Tk * jnp.dtype(attn_out_dtype).itemsize
        + mask_bytes,
    )

    cparams = pltpu.CompilerParams(
        dimension_semantics=("parallel", "parallel"),
        vmem_limit_bytes=vmem_limit,
    )

    kern = _sdpa_kernel if mask_kind is None else _sdpa_masked_kernel
    qkv, attn = pl.pallas_call(
        partial(kern, scale=scale, use_bf16_matmul=use_bf16_matmul),
        grid=grid,
        in_specs=in_specs,
        out_specs=out_specs,
        out_shape=out_shapes,
        compiler_params=cparams,
        cost_estimate=cost,
    )(*args)
    return qkv, attn


# --------------------------------- demo ---------------------------------------

if __name__ == "__main__":
    B, Tq, Tk, D, Dv = 2, 8, 16, 32, 32
    rng = jax.random.PRNGKey(0)
    k1, k2, k3, k4, k5 = jax.random.split(rng, 5)

    key_t = jax.random.normal(k1, (B, Tk, D), dtype=jnp.float32)
    value_t = jax.random.normal(k2, (B, Tk, Dv), dtype=jnp.float32)
    query_t = jax.random.normal(k3, (B, Tq, D), dtype=jnp.float32)

    # Dense (B, Tq, Tk) mask; keep at least one unmasked key per query row.
    mask_d = jax.random.bernoulli(k4, p=0.25, shape=(B, Tq, Tk))
    mask_d = mask_d.at[:, :, 0].set(False)
    # Key-padding (B, Tk) mask (fastspeech2 style); at least one valid key.
    mask_k = jax.random.bernoulli(k5, p=0.25, shape=(B, Tk))
    mask_k = mask_k.at[:, 0].set(False)

    def ref(key, value, query, mask):
        qk = jnp.einsum("bqd,bkd->bqk", query, key,
                        precision=lax.Precision.HIGHEST) / math.sqrt(key.shape[2])
        if mask is not None:
            qk = jnp.where(mask, -jnp.inf, qk)
        attn = jax.nn.softmax(qk, axis=-1)
        qkv = jnp.einsum("bqk,bkv->bqv", attn, value,
                         precision=lax.Precision.HIGHEST)
        return qkv, attn

    # 1) dense mask (exact module semantics)
    qkv_d, attn_d = scaled_dot_product_attention(key_t, value_t, query_t, mask_d)
    # 2) key-padding mask (built/broadcast in-kernel from a (B, Tk) mask)
    qkv_k, attn_k = scaled_dot_product_attention(key_t, value_t, query_t, mask_k)
    # 3) no mask
    qkv_u, attn_u = scaled_dot_product_attention(key_t, value_t, query_t, None)
    # 4) bf16-MXU fast path (compile / sanity check only, looser numerics)
    qkv_b, attn_b = scaled_dot_product_attention(
        key_t, value_t, query_t, None, use_bf16_matmul=True)
    jax.block_until_ready((qkv_d, attn_d, qkv_k, attn_k, qkv_u, attn_u, qkv_b, attn_b))

    r_qkv_d, r_attn_d = ref(key_t, value_t, query_t, mask_d)
    r_qkv_k, r_attn_k = ref(key_t, value_t, query_t, mask_k[:, None, :])
    r_qkv_u, r_attn_u = ref(key_t, value_t, query_t, None)

    assert jnp.allclose(qkv_d, r_qkv_d, atol=1e-4, rtol=1e-3)
    assert jnp.allclose(attn_d, r_attn_d, atol=1e-4, rtol=1e-3)
    assert jnp.allclose(qkv_k, r_qkv_k, atol=1e-4, rtol=1e-3)
    assert jnp.allclose(attn_k, r_attn_k, atol=1e-4, rtol=1e-3)
    assert jnp.allclose(qkv_u, r_qkv_u, atol=1e-4, rtol=1e-3)
    assert jnp.allclose(attn_u, r_attn_u, atol=1e-4, rtol=1e-3)
    # Exact softmax normalization: attention rows sum to 1.
    assert jnp.allclose(attn_d.sum(-1), 1.0, atol=1e-5)
    assert jnp.allclose(attn_u.sum(-1), 1.0, atol=1e-5)
    # bf16 MXU path: coarse sanity only (bf16 operands by construction).
    assert qkv_b.shape == (B, Tq, Dv) and attn_b.shape == (B, Tq, Tk)
    assert bool(jnp.isfinite(qkv_b).all()) and bool(jnp.isfinite(attn_b).all())
    assert jnp.allclose(qkv_b, r_qkv_u, atol=5e-2, rtol=5e-2)

    print("KERNEL_OK")
</pallas_src>

<mosaic_0001>
module attributes {stable_mosaic.version = 11 : i64} {
  func.func @_sdpa_masked_kernel(%arg0: i32, %arg1: i32, %arg2: memref<1x8x32xf32, #tpu.memory_space<vmem>>, %arg3: memref<1x16x32xf32, #tpu.memory_space<vmem>>, %arg4: memref<1x16x32xf32, #tpu.memory_space<vmem>>, %arg5: memref<1x8x16xi8, #tpu.memory_space<vmem>>, %arg6: memref<1x8x32xf32, #tpu.memory_space<vmem>>, %arg7: memref<1x8x16xf32, #tpu.memory_space<vmem>>) attributes {dimension_semantics = [#tpu.dimension_semantics<parallel>, #tpu.dimension_semantics<parallel>], iteration_bounds = array<i64: 2, 1>, scalar_prefetch = 0 : i64, scratch_operands = 0 : i64, tpu.core_type = #tpu.core_type<tc>, window_params = [{transform_indices = @transform_0, window_bounds = array<i64: 1, 8, 32>}, {transform_indices = @transform_1, window_bounds = array<i64: 1, 16, 32>}, {transform_indices = @transform_2, window_bounds = array<i64: 1, 16, 32>}, {transform_indices = @transform_3, window_bounds = array<i64: 1, 8, 16>}, {transform_indices = @transform_4, window_bounds = array<i64: 1, 8, 32>}, {transform_indices = @transform_5, window_bounds = array<i64: 1, 8, 16>}]} {
    %c0 = arith.constant 0 : index
    %c0_0 = arith.constant 0 : index
    %c0_1 = arith.constant 0 : index
    %0 = vector.load %arg5[%c0, %c0_0, %c0_1] : memref<1x8x16xi8, #tpu.memory_space<vmem>>, vector<1x8x16xi8>
    %c0_2 = arith.constant 0 : index
    %c0_3 = arith.constant 0 : index
    %c0_4 = arith.constant 0 : index
    %1 = vector.load %arg2[%c0_2, %c0_3, %c0_4] : memref<1x8x32xf32, #tpu.memory_space<vmem>>, vector<1x8x32xf32>
    %c0_5 = arith.constant 0 : index
    %c0_6 = arith.constant 0 : index
    %c0_7 = arith.constant 0 : index
    %2 = vector.load %arg3[%c0_5, %c0_6, %c0_7] : memref<1x16x32xf32, #tpu.memory_space<vmem>>, vector<1x16x32xf32>
    %c0_8 = arith.constant 0 : index
    %c0_9 = arith.constant 0 : index
    %c0_10 = arith.constant 0 : index
    %3 = vector.load %arg4[%c0_8, %c0_9, %c0_10] : memref<1x16x32xf32, #tpu.memory_space<vmem>>, vector<1x16x32xf32>
    %cst = arith.constant 0.176776692 : f32
    %4 = vector.broadcast %cst : f32 to vector<1x8x32xf32>
    %5 = arith.mulf %1, %4 : vector<1x8x32xf32>
    %cst_11 = arith.constant dense<0.000000e+00> : vector<1x8x16xf32>
    %6 = tpu.matmul %5, %2, %cst_11 {dimension_numbers = #tpu.dot_dimension_numbers<[2], [2], [1], [1], [0, 0, 0, 1, 1, 1], [0], [0]>} : vector<1x8x32xf32>, vector<1x16x32xf32>, vector<1x8x16xf32> -> vector<1x8x16xf32>
    %c0_i8 = arith.constant 0 : i8
    %7 = vector.broadcast %c0_i8 : i8 to vector<1x8x16xi8>
    %8 = arith.cmpi ne, %0, %7 : vector<1x8x16xi8>
    %cst_12 = arith.constant 0xFF800000 : f32
    %9 = vector.broadcast %cst_12 : f32 to vector<1x8x16xf32>
    %10 = arith.select %8, %9, %6 : vector<1x8x16xi1>, vector<1x8x16xf32>
    %cst_13 = arith.constant dense<0xFF800000> : vector<1x8xf32>
    %11 = vector.multi_reduction <maximumf>, %10, %cst_13 [2] : vector<1x8x16xf32> to vector<1x8xf32>
    %12 = vector.shape_cast %11 : vector<1x8xf32> to vector<1x8x1xf32>
    %13 = vector.broadcast %12 : vector<1x8x1xf32> to vector<1x8x16xf32>
    %14 = arith.subf %10, %13 : vector<1x8x16xf32>
    %15 = math.exp %14 : vector<1x8x16xf32>
    %cst_14 = arith.constant dense<0.000000e+00> : vector<1x8xf32>
    %16 = vector.multi_reduction <add>, %15, %cst_14 [2] : vector<1x8x16xf32> to vector<1x8xf32>
    %17 = vector.shape_cast %16 : vector<1x8xf32> to vector<1x8x1xf32>
    %18 = vector.broadcast %17 : vector<1x8x1xf32> to vector<1x8x16xf32>
    %19 = arith.divf %15, %18 : vector<1x8x16xf32>
    %cst_15 = arith.constant dense<0.000000e+00> : vector<1x8x32xf32>
    %20 = tpu.matmul %19, %3, %cst_15 {dimension_numbers = #tpu.dot_dimension_numbers<[2], [1], [1], [2], [0, 0, 0, 1, 1, 2], [0], [0]>} : vector<1x8x16xf32>, vector<1x16x32xf32>, vector<1x8x32xf32> -> vector<1x8x32xf32>
    %c0_16 = arith.constant 0 : index
    %c0_17 = arith.constant 0 : index
    %c0_18 = arith.constant 0 : index
    %21 = vector.load %arg7[%c0_16, %c0_17, %c0_18] : memref<1x8x16xf32, #tpu.memory_space<vmem>>, vector<1x8x16xf32>
    tpu.vector_store %arg7[%c0_16, %c0_17, %c0_18], %19 {strides = array<i32>} : memref<1x8x16xf32, #tpu.memory_space<vmem>>, vector<1x8x16xf32>,
    %c0_19 = arith.constant 0 : index
    %c0_20 = arith.constant 0 : index
    %c0_21 = arith.constant 0 : index
    %22 = vector.load %arg6[%c0_19, %c0_20, %c0_21] : memref<1x8x32xf32, #tpu.memory_space<vmem>>, vector<1x8x32xf32>
    tpu.vector_store %arg6[%c0_19, %c0_20, %c0_21], %20 {strides = array<i32>} : memref<1x8x32xf32, #tpu.memory_space<vmem>>, vector<1x8x32xf32>,
    return
  }
  func.func @transform_0(%arg0: i32, %arg1: i32) -> (i32, i32, i32) {
    %c0_i32 = arith.constant 0 : i32
    %c0_i32_0 = arith.constant 0 : i32
    return %arg0, %arg1, %c0_i32 : i32, i32, i32
  }
  func.func @transform_1(%arg0: i32, %arg1: i32) -> (i32, i32, i32) {
    %c0_i32 = arith.constant 0 : i32
    %c0_i32_0 = arith.constant 0 : i32
    %c0_i32_1 = arith.constant 0 : i32
    return %arg0, %c0_i32, %c0_i32_0 : i32, i32, i32
  }
  func.func @transform_2(%arg0: i32, %arg1: i32) -> (i32, i32, i32) {
    %c0_i32 = arith.constant 0 : i32
    %c0_i32_0 = arith.constant 0 : i32
    %c0_i32_1 = arith.constant 0 : i32
    return %arg0, %c0_i32, %c0_i32_0 : i32, i32, i32
  }
  func.func @transform_3(%arg0: i32, %arg1: i32) -> (i32, i32, i32) {
    %c0_i32 = arith.constant 0 : i32
    %c0_i32_0 = arith.constant 0 : i32
    return %arg0, %arg1, %c0_i32 : i32, i32, i32
  }
  func.func @transform_4(%arg0: i32, %arg1: i32) -> (i32, i32, i32) {
    %c0_i32 = arith.constant 0 : i32
    %c0_i32_0 = arith.constant 0 : i32
    return %arg0, %arg1, %c0_i32 : i32, i32, i32
  }
  func.func @transform_5(%arg0: i32, %arg1: i32) -> (i32, i32, i32) {
    %c0_i32 = arith.constant 0 : i32
    %c0_i32_0 = arith.constant 0 : i32
    return %arg0, %arg1, %c0_i32 : i32, i32, i32
  }
}

</mosaic_0001>

<bundles_post_ra>
// kernel: tpu_custom_call.1
= control target key start
LH: loop header
LB: loop body
LE: loop exit
PB: predicated region body
PF: predicated region fallthrough
CT: control target
= control target key end

     0   :  { %s1387_s0 = inlined_call_operand.hbm [shape: f32[2,8,32], index: 0, kind: input, shape index: {}]   ;;  %s1388_s1 = inlined_call_operand.hbm [shape: f32[2,16,32], index: 1, kind: input, shape index: {}]   ;;  %s1389_s2 = inlined_call_operand.hbm [shape: f32[2,16,32], index: 2, kind: input, shape index: {}]   ;;  %s1390_s3 = inlined_call_operand.vmem [shape: s8[2,8,16], index: 3, kind: input, shape index: {}]   ;;  %s1391_s4 = inlined_call_operand.hbm [shape: f32[2,8,32], index: 4, kind: output, shape index: {0}]   ;;  %s1392_s5 = inlined_call_operand.hbm [shape: f32[2,8,16], index: 5, kind: output, shape index: {1}]  }
   0x1   :  { %1398 = sst [smem:[#allocation20_spill]] %s1388_s1 }
   0x2   :  { %11 = vsyncpa [#allocation3], 0 }
   0x3   :  { %13 = vsyncpa [#allocation3 + $0x1], 0 }
   0x4   :  { %14 = vsyncpa [#allocation6], 0 }
   0x5   :  { %16 = vsyncpa [#allocation6 + $0x1], 0 }
   0x6   :  { %17 = vsyncpa [#allocation4], 0 }
   0x7   :  { %19 = vsyncpa [#allocation4 + $0x1], 0 }
   0x8   :  { %20 = vsyncpa [#allocation10], 0 }
   0x9   :  { %22 = vsyncpa [#allocation10 + $0x1], 0  ;;  %s1138_s18 = smov 0   ;;  %s1140_s19 = smov 0  }
   0xa   :  { %s1142_s20 = smov 0   ;;  %s1144_s21 = smov 0  }
   0xb   :  { %s1146_s22 = smov 0   ;;  %s1148_s23 = smov 0  }
   0xc LB: > { %1399 = sst [smem:[#allocation15_spill]] %s1076_s18  ;;  %s1169_s24 = sadd.s32 4294967295, %s1096_s23   ;;  %s1096_s23 = sphi %s1148_s23, %s28_s23   ;;  %s1092_s22 = sphi %s1146_s22, %s1421_s22   ;;  %s1088_s21 = sphi %s1144_s21, %s1420_s21   ;;  %s1084_s20 = sphi %s1142_s20, %s1416_s20   ;;  %s1080_s19 = sphi %s1140_s19, %s1419_s19   ;;  %s1076_s18 = sphi %s1138_s18, %s1418_s18  }
   0xd   : > { %1400 = sst [smem:[#allocation16_spill]] %s1084_s20  ;;  %s762_s25 = sadd.s32 4294967294, %s1096_s23  }
   0xe   : > { %s40_s26 = sadd.s32 1, %s1092_s22  ;;  %s49_s27 = sadd.s32 1, %s1084_s20 }
   0xf   : > { %p42_p0 = scmp.ge.s32.totalorder %s40_s26, 2  ;;  %p56_p1 = scmp.ne.s32.totalorder %s1084_s20, %s1080_s19 }
  0x10   : > { %p57_p2 = scmp.eq.s32.totalorder %s1096_s23, 0  ;;  %p62_p3 = scmp.ne.s32.totalorder %s1080_s19, %s1076_s18 }
  0x11   : > { %s1423_s26 = smov (%p42_p0, %s40_s26), 0  ;;  %p63_p5 = scmp.eq.s32.totalorder %s1169_s24, 0 }
  0x12   : > { %1401 = sst [smem:[#allocation17_spill]] %s1423_s26  ;;  %p1181_p4 = por %p57_p2, %p56_p1 }
  0x13   : > { %s44_s29 = ssub.s32 %s1092_s22, %s1423_s26  ;;  %p168_p6 = scmp.eq.s32.totalorder %s1169_s24, 1 }
  0x14   : > { %p47_p7 = scmp.eq.s32.totalorder %s44_s29, 0  ;;  %p1189_p8 = por %p63_p5, %p62_p3 }
  0x15   : > { %p1193_p9 = por %p168_p6, %p56_p1  ;;  %p174_p10 = scmp.eq.s32.totalorder %s762_s25, 1 }
  0x16   : > { %s1198_s7 = scalar_select %p47_p7, %s1084_s20, %s49_s27  }
  0x17   : > { %p1200_p11 = por %p174_p10, %p62_p3  ;;  %p839_p13 = scmp.lt.s32.totalorder %s1096_s23, 2 }
  0x18   : > { %1405 = sst [smem:[#allocation18_spill]] %s1198_s7  ;;  %s1207_s9 = sand.u32 1, %s1084_s20  }
  0x19   : > { %s1406_s8 = scalar_select %p1200_p11, 1, 0 }
  0x1a   : > { %s241_s10 = sand.u32 1, %s1096_s23   ;;  %s767_s11 = sshll.u32 %s1207_s9, 4 }
  0x1b   : > { %1407 = sst [smem:[#allocation19_spill]] %s1406_s8  ;;  %p1213_p0 = pnand %p839_p13, %p1181_p4 }
  0x1c   : > { %s790_s13 = sshll.u32 %s1092_s22, 8  ;;  %s1409_s1 = sld [smem:[#allocation20_spill]] }
  0x1d   : > { %s245_s17 = scalar_lea.vmem [#allocation5], %s767_s11  ;;  %s1223_s27 = scalar_lea.sflag [#allocation6], %s241_s10 }
  0x1e   : > { %s252_s25 = sshll.u32 %s245_s17, 4  ;;  %p900_p1 = pneg %p1213_p0  ;;  %s253_s25 = int_to_ptr.vmem [resolvable:$true] %s252_s25 }
  0x1f   : > { %s911_s28 = scalar_lea.vmem %s253_s25, 256  ;;  %s1098_s29 = smov [#allocation5]  }
  0x20   : > { %p912_p2 = scmp.ne.s32.totalorder %s253_s25, %s911_s28  ;;  %s916_s26 = sshll.u32 %s1098_s29, 4  ;;  %s917_s26 = int_to_ptr.vmem [resolvable:$false] %s916_s26 }
  0x21   : > { %s918_s7 = scalar_lea.vmem %s917_s26, 512  ;;  %p919_p5 = scmp.lt.s32.totalorder %s253_s25, %s917_s26 }
  0x22   : > { %s251_s16 = scalar_lea.hbm %s1409_s1, %s790_s13  ;;  %p914_p3 = pnand %p912_p2, %p900_p1 }
  0x23   : > { %p920_p6 = scmp.lt.s32.totalorder %s918_s7, %s911_s28 }
  0x24   : > { %p915_p4 = pneg %p914_p3 }
  0x25   : > { %p921_p7 = por %p920_p6, %p919_p5 }
  0x27   : > { %p922_p10 = pnand %p921_p7, %p915_p4 }
  0x29   : > { %925 = shalt.err (!%p922_p10)
}
  0x2a   : > { %s1397_s14 = smov 128   ;;  %s1100_s10 = smov 8  }
  0x2b   : > { %828 = dma.hbm_to_vmem [thread:$0]  (!%p1213_p0), %s251_s16, 256, %s253_s25, %s1223_s27, %s1397_s14, %s1397_s14, %s1100_s10  }
  0x2c   : > { %s1239_s15 = scalar_lea.hbm %s1389_s2, %s790_s13  ;;  %p773_p13 = scmp.ge.s32.totalorder %s1096_s23, 1 }
  0x2d   : > { %s266_s17 = scalar_lea.vmem [#allocation7], %s767_s11  ;;  %p291_p2 = scmp.lt.s32.totalorder %s1096_s23, 3 }
  0x2e   : > { %s273_s28 = sshll.u32 %s266_s17, 4  ;;  %s765_s1 = sshll.u32 %s1207_s9, 3  ;;  %s1254_s28 = int_to_ptr.vmem [resolvable:$true] %s273_s28 }
  0x2f   : > { %p1245_p3 = pnand %p773_p13, %p291_p2  ;;  %s766_s20 = sshll.u32 %s1092_s22, 7 }
  0x30   : > { %s232_s16 = scalar_lea.hbm %s1387_s0, %s766_s20  ;;  %s226_s13 = scalar_lea.vmem [#allocation2], %s765_s1 }
  0x31   : > { %s234_s25 = sshll.u32 %s226_s13, 4  ;;  %s223_s26 = scalar_lea.sflag [#allocation3], %s1207_s9  ;;  %s235_s25 = int_to_ptr.vmem [resolvable:$true] %s234_s25 }
  0x32   : > { %s939_s7 = scalar_lea.vmem %s235_s25, 128  ;;  %s1101_s11 = smov [#allocation2]  }
  0x33   : > { %p940_p4 = scmp.ne.s32.totalorder %s235_s25, %s939_s7  ;;  %s944_s17 = sshll.u32 %s1101_s11, 4  ;;  %s945_s17 = int_to_ptr.vmem [resolvable:$false] %s944_s17 }
  0x34   : > { %s946_s14 = scalar_lea.vmem %s945_s17, 256  ;;  %p947_p7 = scmp.lt.s32.totalorder %s235_s25, %s945_s17 }
  0x35   : > { %p942_p5 = pnand %p940_p4, %p900_p1  ;;  %p948_p10 = scmp.lt.s32.totalorder %s946_s14, %s939_s7 }
  0x37   : > { %p943_p6 = pneg %p942_p5  ;;  %p949_p13 = por %p948_p10, %p947_p7 }
  0x39   : > { %p950_p2 = pnand %p949_p13, %p943_p6 }
  0x3b   : > { %953 = shalt.err (!%p950_p2)
}
  0x3c   : > { %825 = dma.hbm_to_vmem [thread:$0]  (!%p1213_p0), %s232_s16, 128, %s235_s25, %s223_s26  }
  0x3d   : > { %s967_s1 = scalar_lea.vmem %s1254_s28, 256  ;;  %s1102_s18 = smov [#allocation7]  }
  0x3e   : > { %p968_p12 = scmp.ne.s32.totalorder %s1254_s28, %s967_s1  ;;  %s972_s20 = sshll.u32 %s1102_s18, 4  ;;  %s973_s20 = int_to_ptr.vmem [resolvable:$false] %s972_s20 }
  0x3f   : > { %s974_s8 = scalar_lea.vmem %s973_s20, 512  ;;  %p975_p7 = scmp.lt.s32.totalorder %s1254_s28, %s973_s20 }
  0x40   : > { %p970_p4 = pnand %p968_p12, %p900_p1  ;;  %p976_p6 = scmp.lt.s32.totalorder %s974_s8, %s967_s1 }
  0x42   : > { %p971_p5 = pneg %p970_p4  ;;  %p977_p10 = por %p976_p6, %p975_p7 }
  0x44   : > { %p978_p13 = pnand %p977_p10, %p971_p5 }
  0x46   : > { %981 = shalt.err (!%p978_p13)
}
  0x47   : > { %s1411_s9 = smov 128   ;;  %295 = sbr.rel (%p1245_p3) target bundleno = 803 (0x323), region = 36 }
  0x48   : > { %831 = dma.hbm_to_vmem [thread:$0]  (!%p1213_p0), %s1239_s15, 256, %s1254_s28, %s1223_s27, %s1411_s9, %s1411_s9, %s1100_s10  }
  0x49   : > { %s1279_s14 = sand.u32 (!%p1245_p3), 1, %s1080_s19  }
  0x4a   : > { %s1282_s16 = sshll.u32 (!%p1245_p3), %s1279_s14, 3  ;;  %s298_s12 = scalar_lea.sflag (!%p1245_p3), [#allocation3], %s1279_s14 }
  0x4b   : > { %s301_s13 = scalar_lea.vmem (!%p1245_p3), [#allocation2], %s1282_s16 }
  0x4c   : > { %1059 = dma.done.wait (%p1189_p8), %s298_s12, 128  }
  0x4d   : > { %1061 = vsyncadd (%p1189_p8), %s298_s12, 4294967168  ;;  %s306_s27 = sand.u32 1, %s1169_s24   ;;  %s775_s10 = sshll.u32 %s1279_s14, 4 }
  0x4e   : > { %s307_s15 = scalar_lea.sflag [#allocation6], %s306_s27  ;;  %s310_s28 = scalar_lea.vmem [#allocation5], %s775_s10 }
  0x4f   : > { %1063 = dma.done.wait (%p1189_p8), %s307_s15, 512  }
  0x50   : > { %1065 = vsyncadd (%p1189_p8), %s307_s15, 4294966784  ;;  %v1103_v0 = vmov 0.0   ;;  %vm1104_vm0 = vmmov 0   ;;  %vm384_vm1 = vcmask 261120   ;;  %v380_v1 = vld [vmem:[%s310_s28 + $0x8] sm:$0xff]  ;;  %v379_v3 = vld [vmem:[%s310_s28] sm:$0xff] }
  0x51   : > { %798 = vmatprep.subr.mxu0 %v1103_v0  ;;  %802 = vmatprep.mubr.msk.f32.mxu0 %vm1104_vm0, %v1103_v0  ;;  %v378_v2 = vld [vmem:[%s301_s13] sm:$0xff]  ;;  %p368_p8 = scmp.lt.s32.totalorder %s1088_s21, 1  ;;  %v1105_v6 = vmov 0   ;;  %vm469_vm4 = vcmask 130048   ;;  %s319_s7 = scalar_lea.vmem [#allocation7], %s775_s10 }
  0x52   : > { %805 = vmatprep.subr.mxu1 %v1103_v0  ;;  %809 = vmatprep.mubr.msk.f32.mxu1 %vm1104_vm0, %v1103_v0  ;;  %v383_v4 = vmul.f32 0.17677669, %v378_v2  ;;  %v382_v18 = vld [vmem:[%s319_s7 + $0x8] sm:$0xff]  ;;  %v381_v19 = vld [vmem:[%s319_s7] sm:$0xff]  ;;  %s367_s11 = scalar_lea.vmem [#allocation9], %s1282_s16  ;;  %s786_s17 = sshll.u32 %s1088_s21, 7 }
  0x53   : > { %799 = vmatpush3.xpose.msk.msra.mxu0 %vm384_vm1, %v380_v1  ;;  %s369_s24 = scalar_select %p368_p8, %s1088_s21, 1  ;;  %806 = vmatpush3.msra.mxu1 %v382_v18 }
  0x54   : > { %800 = vmatprep.subr.mxu0 %v1103_v0  ;;  %807 = vmatprep.subr.mxu1 %v1103_v0  ;;  %s588_s20 = scalar_lea.hbm %s1392_s5, %s786_s17  ;;  %s590_s8 = sshll.u32 %s367_s11, 4  ;;  %s591_s8 = int_to_ptr.vmem [resolvable:$true] %s590_s8 }
  0x55   : > { %s779_s30 = sshll.u32 %s369_s24, 1  ;;  %808 = vmatpush3.msra.mxu1 %v381_v19  ;;  %s562_s9 = scalar_lea.sflag [#allocation10], %s1279_s14 }
  0x56   : > { %s374_s26 = scalar_lea.vmem %s1390_s3, %s779_s30  ;;  %s982_s12 = scalar_lea.vmem %s591_s8, 128 }
  0x57   : > { %801 = vmatpush3.xpose.msk.msra.mxu0 %vm384_vm1, %v379_v3  ;;  %v377_v5 = vld [vmem:[%s374_s26] sm:$0x3]  ;;  %p983_p12 = scmp.ne.s32.totalorder %s591_s8, %s982_s12  ;;  %s1106_s13 = smov [#allocation9]  }
  0x58   : > { %vm464_vm2 = vnez %v377_v5  ;;  %s986_s27 = sshll.u32 %s1106_s13, 4  ;;  %s987_s27 = int_to_ptr.vmem [resolvable:$false] %s986_s27 }
  0x59   : > { %v465_v7 = vsel %vm464_vm2, 16843009, %v1105_v6  ;;  %p984_p0 = pnand %p983_p12, %p1193_p9  ;;  %s988_s10 = scalar_lea.vmem %s987_s27, 256 }
  0x5a   : > { %803 = vmatmul.mubr.msk.f32.vlgmr.msra.gmra.mxu0 %vm384_vm1, %v383_v4  ;;  %v466_v8 = vunpack.c.0.s8 %v465_v7  ;;  %p989_p3 = scmp.lt.s32.totalorder %s591_s8, %s987_s27  ;;  %p990_p2 = scmp.lt.s32.totalorder %s988_s10, %s982_s12 }
  0x5b   : > { %p985_p1 = pneg %p984_p0 }
  0x5c   : > { %vm467_vm3 = vcmp.ne.s32.totalorder %v466_v8, 0  ;;  %p991_p4 = por %p990_p2, %p989_p3 }
  0x5e   : > { %p992_p5 = pnand %p991_p4, %p985_p1 }
 0x11a   : > { %v460_v9 = vpop.f32.mrf.mxu0 }
 0x11b   : > { %v468_v10 = vsel %vm467_vm3, -inf, %v460_v9 }
 0x11c   : > { %v804_v11 = vpop.f32.mrf.mxu0  ;;  %v470_v12 = vsel %vm469_vm4, %v468_v10, -inf }
 0x11d   : > { %471 = vmax.xlane.f32.xlu0 %v470_v12 }
 0x1a6   : > { %v472_v13 = vpop.xlane.xlu0 %471 }
 0x1a7   : > { %v473_v14 = vsub.f32 %v468_v10, %v472_v13 }
 0x1a9   : > { %v474_v15 = vmul.f32 1.442695, %v473_v14 }
 0x1ab   : > { %894 = vpow2.f32 %v474_v15 }
 0x1b8   : > { %v895_v16 = vpop.eup %894 }
 0x1b9   : > { %v476_v17 = vsel %vm469_vm4, %v895_v16, 0.0 }
 0x1ba   : > { %477 = vadd.xlane.f32.xlu0 %v476_v17 }
 0x243   : > { %v478_v20 = vpop.xlane.xlu0 %477 }
 0x244   : > { %896 = vrcp.f32 %v478_v20 }
 0x251   : > { %v897_v21 = vpop.eup %896 }
 0x252   : > { %v480_v22 = vmul.f32 %v897_v21, %v895_v16 }
 0x254   : > { %810 = vmatmul.mubr.msk.f32.vlgmr.msra.gmra.mxu1 %vm469_vm4, %v480_v22  ;;  %554 = vst.msk [vmem:[%s367_s11] sm:$0xff] %vm469_vm4, %v480_v22 }
 0x255   : > { %995 = shalt.err (!%p992_p5)
}
 0x256   : > { %s996_s15 = scalar_lea.hbm %s588_s20, 128  ;;  %s1000_s30 = scalar_lea.hbm %s1392_s5, 256 }
 0x257   : > { %p997_p7 = scmp.ne.s32.totalorder %s588_s20, %s996_s15  ;;  %p1001_p13 = scmp.lt.s32.totalorder %s588_s20, %s1392_s5 }
 0x258   : > { %p1002_p8 = scmp.lt.s32.totalorder %s1000_s30, %s996_s15 }
 0x259   : > { %p998_p6 = pnand %p997_p7, %p1193_p9 }
 0x25a   : > { %p1003_p12 = por %p1002_p8, %p1001_p13 }
 0x25b   : > { %p999_p10 = pneg %p998_p6 }
 0x25d   : > { %p1004_p0 = pnand %p1003_p12, %p999_p10 }
 0x25f   : > { %1007 = shalt.err (!%p1004_p0)
}
 0x260   : > { %819 = dma.vmem_to_hbm [thread:$0]  (%p1193_p9), %s591_s8, 128, %s588_s20, %s562_s9  }
 0x261   : > { %s360_s26 = scalar_lea.vmem [#allocation8], %s1282_s16  ;;  %s1338_s18 = scalar_lea.hbm %s1391_s4, %s786_s17 }
 0x262   : > { %s576_s7 = sshll.u32 %s360_s26, 4  ;;  %s557_s12 = scalar_lea.sflag [#allocation4], %s1279_s14  ;;  %s1340_s7 = int_to_ptr.vmem [resolvable:$true] %s576_s7 }
 0x263   : > { %s1008_s13 = scalar_lea.vmem %s1340_s7, 128  ;;  %s1107_s21 = smov [#allocation8]  }
 0x264   : > { %p1009_p1 = scmp.ne.s32.totalorder %s1340_s7, %s1008_s13  ;;  %s1012_s16 = sshll.u32 %s1107_s21, 4  ;;  %s1013_s16 = int_to_ptr.vmem [resolvable:$false] %s1012_s16 }
 0x265   : > { %s1014_s17 = scalar_lea.vmem %s1013_s16, 256  ;;  %p1015_p4 = scmp.lt.s32.totalorder %s1340_s7, %s1013_s16 }
 0x266   : > { %p1010_p3 = pnand %p1009_p1, %p1193_p9  ;;  %p1016_p5 = scmp.lt.s32.totalorder %s1014_s17, %s1008_s13 }
 0x268   : > { %p1011_p2 = pneg %p1010_p3  ;;  %p1017_p7 = por %p1016_p5, %p1015_p4 }
 0x26a   : > { %p1018_p6 = pnand %p1017_p7, %p1011_p2 }
 0x314   : > { %v550_v23 = vpop.f32.mrf.mxu1 }
 0x315   : > { %555 = vst.msk [vmem:[%s360_s26] sm:$0xff] %vm384_vm1, %v550_v23 }
 0x316   : > { %v811_v24 = vpop.f32.mrf.mxu1 }
 0x317   : > { %1021 = shalt.err (!%p1018_p6)
}
 0x318   : > { %s1022_s20 = scalar_lea.hbm %s1338_s18, 128  ;;  %s1026_s9 = scalar_lea.hbm %s1391_s4, 256 }
 0x319   : > { %p1023_p10 = scmp.ne.s32.totalorder %s1338_s18, %s1022_s20  ;;  %p1027_p12 = scmp.lt.s32.totalorder %s1338_s18, %s1391_s4 }
 0x31a   : > { %p1028_p0 = scmp.lt.s32.totalorder %s1026_s9, %s1022_s20 }
 0x31b   : > { %p1024_p13 = pnand %p1023_p10, %p1193_p9 }
 0x31c   : > { %p1029_p1 = por %p1028_p0, %p1027_p12 }
 0x31d   : > { %p1025_p8 = pneg %p1024_p13 }
 0x31f   : > { %p1030_p3 = pnand %p1029_p1, %p1025_p8 }
 0x321   : > { %1033 = shalt.err (!%p1030_p3)
}
 0x322   : > { %818 = dma.vmem_to_hbm [thread:$0]  (%p1193_p9), %s1340_s7, 128, %s1338_s18, %s557_s12  }
 0x323 PF: > { %s1412_s15 = sld [smem:[#allocation15_spill]]  ;;  %p1414_p2 = scmp.ge.s32.totalorder %s1096_s23, 2 }
 0x325   : > { %p833_p4 = pnand %p1414_p2, %p1200_p11 }
 0x327   : > { %p834_p5 = pneg %p833_p4 }
 0x329   : > { %s602_s24 = sand.u32 1, %s1412_s15  }
 0x32a   : > { %s603_s30 = scalar_lea.sflag [#allocation4], %s602_s24 }
 0x32b   : > { %1067 = dma.done.wait (%p834_p5), %s603_s30, 128  }
 0x32c   : > { %1069 = vsyncadd (%p834_p5), %s603_s30, 4294967168  ;;  %s612_s29 = scalar_lea.sflag [#allocation10], %s602_s24 }
 0x32d   : > { %1071 = dma.done.wait (%p834_p5), %s612_s29, 128  }
 0x32e   : > { %1073 = vsyncadd (%p834_p5), %s612_s29, 4294967168  ;;  %s28_s23 = sadd.s32 1, %s1096_s23   ;;  %s1415_s6 = sld [smem:[#allocation16_spill]] }
 0x32f   : > { %p25_p7 = scmp.ge.s32.totalorder %s28_s23, 4   ;;  %s1416_s20 = sld [smem:[#allocation18_spill]] }
 0x330   : > { %s1417_s25 = sld [smem:[#allocation17_spill]]  ;;  %s1418_s18 = smov %s1080_s19 }
 0x331   : > { %s1420_s21 = smov %s1092_s22 }
 0x332   :  { %27 = sbr.rel (!%p25_p7) target bundleno = 12 (0xc), region = 125 }
 0x334   : > { %s1419_s19 = smov %s1415_s6 }
 0x336   : > { %s1421_s22 = smov %s1417_s25 }
 0x337   :  { %617 = vsyncpa [#allocation3], 1 }
 0x338   :  { %619 = vsyncpa [#allocation3 + $0x1], 1 }
 0x339   :  { %620 = vsyncpa [#allocation6], 1 }
 0x33a   :  { %622 = vsyncpa [#allocation6 + $0x1], 1 }
 0x33b   :  { %623 = vsyncpa [#allocation4], 1 }
 0x33c   :  { %625 = vsyncpa [#allocation4 + $0x1], 1 }
 0x33d   :  { %626 = vsyncpa [#allocation10], 1 }
 0x33e   :  { %628 = vsyncpa [#allocation10 + $0x1], 1 }

</bundles_post_ra>
